<compile_context>
chip_gen: v5e
topology: v5e:2x2
jax: 0.10.0
libtpu: 0.0.40
codegen_flags: <defaults>
</compile_context>

<pallas_src>
import functools

import jax
import jax.numpy as jnp
from jax.experimental import pallas as pl
from jax.experimental.pallas import tpu as pltpu


# ----------------------------------------------------------------------------
# Chip-aware compiler params / tiling helpers
# ----------------------------------------------------------------------------
def _default_vmem_limit():
    # ~3/4 of physical VMEM, capped: 96 MiB on v5e/v6e (128 MiB phys),
    # 48 MiB on v7x (64 MiB phys).  Falls back to a v7x-safe 48 MiB.
    limit = 48 * 1024 * 1024
    try:
        phys = int(pltpu.get_tpu_info().vmem_capacity_bytes)
        limit = max(32 * 1024 * 1024, min(phys * 3 // 4, 100 * 1024 * 1024))
    except Exception:
        pass
    return limit


_COMPILER_PARAMS = pltpu.CompilerParams(
    dimension_semantics=("parallel",),          # independent lane tiles (megacore-splittable)
    vmem_limit_bytes=_default_vmem_limit(),
)

_LANE_TILE_BUDGET = 4 * 1024 * 1024             # per buffered block (Pallas double-buffers)


def _round_up(x, m):
    return ((x + m - 1) // m) * m


def _lane_tile(M, bytes_per_lane):
    """Largest multiple-of-128 lane tile dividing M, sized from a VMEM budget,
    preferring >= 2 grid steps (keeps both v7x TensorCores busy)."""
    assert M % 128 == 0
    cap = max(128, min(M, (_LANE_TILE_BUDGET // max(bytes_per_lane, 1)) // 128 * 128))
    cands = [t for t in range(128, cap + 1, 128) if M % t == 0]
    if not cands:
        cands = [128]
    good = [t for t in cands if 2 * t <= M]
    return max(good) if good else max(cands)


def _pad_lanes(x2d, Mp):
    M = x2d.shape[1]
    if Mp == M:
        return x2d
    return jnp.pad(x2d, ((0, 0), (0, Mp - M)))


# ----------------------------------------------------------------------------
# Pallas kernels (all blocks are (C, tm): sublanes = channels, lanes = pixels)
# ----------------------------------------------------------------------------
def _conv_stats_kernel(w_ref, b_ref, a_ref, o_ref, s_ref, ss_ref):
    # yp = W (C,K) @ A (K,tm); stats are PRE-BIAS so zero-padded lanes are inert.
    yp = jnp.dot(w_ref[...], a_ref[...], preferred_element_type=jnp.float32)
    s_ref[...] = jnp.sum(yp, axis=1, keepdims=True)[None]        # (1, C, 1)
    ss_ref[...] = jnp.sum(yp * yp, axis=1, keepdims=True)[None]  # (1, C, 1)
    o_ref[...] = yp + b_ref[...]


def _bn_relu_kernel(y_ref, sc_ref, sh_ref, o_ref):
    # relu(y * scale + shift)            scale/shift are (C, 1) columns
    o_ref[...] = jnp.maximum(y_ref[...] * sc_ref[...] + sh_ref[...], 0.0)


def _bn_add_relu_kernel(y_ref, sc_ref, sh_ref, r_ref, o_ref):
    # relu(y * scale + shift + residual)
    o_ref[...] = jnp.maximum(
        y_ref[...] * sc_ref[...] + sh_ref[...] + r_ref[...], 0.0)


def _bn_shortcut_relu_kernel(y_ref, sc_ref, sh_ref, xs_ref, w3_ref, b3_ref, o_ref):
    # fused 1x1-conv shortcut: relu(y * scale + shift + (W3 @ x_s + b3))
    short = (jnp.dot(w3_ref[...], xs_ref[...], preferred_element_type=jnp.float32)
             + b3_ref[...])
    o_ref[...] = jnp.maximum(
        y_ref[...] * sc_ref[...] + sh_ref[...] + short, 0.0)


# ----------------------------------------------------------------------------
# Pallas wrappers
# ----------------------------------------------------------------------------
def conv_bn_stats(a, w, b):
    """y = w(C,K) @ a(K,Mp) + b, tiled over lanes, plus per-tile per-channel
    pre-bias [sum, sum-of-squares] partials for BatchNorm (fused, no extra
    HBM pass over the conv output)."""
    K, Mp = a.shape
    C = w.shape[0]
    bytes_per_lane = K * a.dtype.itemsize + 4 * C          # streamed A + streamed y
    tm = _lane_tile(Mp, bytes_per_lane)
    gm = Mp // tm
    y, s, ss = pl.pallas_call(
        _conv_stats_kernel,
        grid=(gm,),
        in_specs=[
            pl.BlockSpec((C, K), lambda i: (0, 0)),        # weights: VMEM-resident
            pl.BlockSpec((C, 1), lambda i: (0, 0)),        # bias column
            pl.BlockSpec((K, tm), lambda i: (0, i)),       # im2col lanes (bf16)
        ],
        out_specs=(
            pl.BlockSpec((C, tm), lambda i: (0, i)),
            pl.BlockSpec((1, C, 1), lambda i: (i, 0, 0)),  # no 8-sublane broadcast
            pl.BlockSpec((1, C, 1), lambda i: (i, 0, 0)),
        ),
        out_shape=(
            jax.ShapeDtypeStruct((C, Mp), jnp.float32),
            jax.ShapeDtypeStruct((gm, C, 1), jnp.float32),
            jax.ShapeDtypeStruct((gm, C, 1), jnp.float32),
        ),
        compiler_params=_COMPILER_PARAMS,
    )(w, b, a)
    return y, s, ss


def bn_scale_shift(s, ss, bias_col, m_total, gamma, beta, eps=1e-5):
    """Reduce the tiny [gm, C, 1] pre-bias partials into per-channel scale/shift.
    Training-mode BN => biased variance over the m_total REAL pixels (padded
    lanes contributed exact zeros pre-bias, so they drop out here)."""
    sum_pre = jnp.sum(s[:, :, 0], axis=0)                  # (C,)
    sumsq_pre = jnp.sum(ss[:, :, 0], axis=0)               # (C,)
    mean_pre = sum_pre / m_total
    var = jnp.maximum(sumsq_pre / m_total - mean_pre * mean_pre, 0.0)
    mean = mean_pre + bias_col[:, 0]                       # y = yp + bias
    scale = gamma[:, 0] * jax.lax.rsqrt(var + eps)
    shift = beta[:, 0] - mean * scale
    return scale.reshape(-1, 1), shift.reshape(-1, 1)


def bn_relu(y, scale, shift, resid=None, shortcut=None):
    """relu(y*scale + shift [+ resid | + 1x1-conv shortcut]), lane-tiled."""
    C, Mp = y.shape
    bytes_per_lane = 8 * C                                  # y in + out, both f32
    if resid is not None:
        bytes_per_lane += resid.shape[0] * resid.dtype.itemsize
    if shortcut is not None:
        bytes_per_lane += shortcut[0].shape[0] * shortcut[0].dtype.itemsize
    tm = _lane_tile(Mp, bytes_per_lane)
    gm = Mp // tm

    in_specs = [
        pl.BlockSpec((C, tm), lambda i: (0, i)),
        pl.BlockSpec((C, 1), lambda i: (0, 0)),
        pl.BlockSpec((C, 1), lambda i: (0, 0)),
    ]
    args = [y, scale, shift]
    if shortcut is not None:
        xs, w3, b3 = shortcut
        cin = xs.shape[0]
        in_specs += [
            pl.BlockSpec((cin, tm), lambda i: (0, i)),
            pl.BlockSpec((C, cin), lambda i: (0, 0)),
            pl.BlockSpec((C, 1), lambda i: (0, 0)),
        ]
        args += [xs, w3, b3]
        kernel = _bn_shortcut_relu_kernel
    elif resid is not None:
        in_specs.append(pl.BlockSpec((C, tm), lambda i: (0, i)))
        args.append(resid)
        kernel = _bn_add_relu_kernel
    else:
        kernel = _bn_relu_kernel

    return pl.pallas_call(
        kernel,
        grid=(gm,),
        in_specs=in_specs,
        out_specs=pl.BlockSpec((C, tm), lambda i: (0, i)),
        out_shape=jax.ShapeDtypeStruct((C, Mp), jnp.float32),
        compiler_params=_COMPILER_PARAMS,
    )(*args)


# ----------------------------------------------------------------------------
# Plain-JAX glue: channel-major im2col, parameter init (weights packed once)
# ----------------------------------------------------------------------------
def im2col_t(x_cf, k, stride, pad):
    """x_cf: (C, N, H, W) -> A^T of shape (K, M) with K ordered (cin, kh, kw)
    and M = N*Ho*Wo on the lane axis."""
    C, N, H, W = x_cf.shape
    xp = jnp.pad(x_cf, ((0, 0), (0, 0), (pad, pad), (pad, pad)))
    Hp, Wp = H + 2 * pad, W + 2 * pad
    Ho = (Hp - k) // stride + 1
    Wo = (Wp - k) // stride + 1
    taps = []
    for kh in range(k):
        for kw in range(k):
            taps.append(xp[:, :, kh:kh + stride * Ho:stride, kw:kw + stride * Wo:stride])
    cols = jnp.stack(taps, axis=1)                         # (C, k*k, N, Ho, Wo)
    return cols.reshape(C * k * k, N * Ho * Wo), (N, Ho, Wo)


def init_conv_packed(key, cout, cin, k, w_dtype):
    """PyTorch Conv2d default init, packed to (Cout, K) with K = (cin, kh, kw)."""
    wkey, bkey = jax.random.split(key)
    fan_in = cin * k * k
    bound = 1.0 / (fan_in ** 0.5)
    w = jax.random.uniform(wkey, (cout, cin, k, k), jnp.float32, -bound, bound)
    b = jax.random.uniform(bkey, (cout,), jnp.float32, -bound, bound)
    return w.reshape(cout, cin * k * k).astype(w_dtype), b.reshape(cout, 1)


def init_residual(key, cin, cout, use_1x1):
    k1, k2, k3 = jax.random.split(key, 3)
    p = {}
    # 3x3 conv weights in bf16 (MXU-native); biases stay f32.
    p["w1"], p["b1"] = init_conv_packed(k1, cout, cin, 3, jnp.bfloat16)
    p["w2"], p["b2"] = init_conv_packed(k2, cout, cout, 3, jnp.bfloat16)
    # BatchNorm2d defaults: weight=1, bias=0
    p["bn1_g"] = jnp.ones((cout, 1), jnp.float32)
    p["bn1_b"] = jnp.zeros((cout, 1), jnp.float32)
    p["bn2_g"] = jnp.ones((cout, 1), jnp.float32)
    p["bn2_b"] = jnp.zeros((cout, 1), jnp.float32)
    if use_1x1:
        # tiny fused shortcut weight kept f32 (negligible traffic, best parity)
        p["w3"], p["b3"] = init_conv_packed(k3, cout, cin, 1, jnp.float32)
    return p


def init_res_block(key, cin, cout, stride):
    k1, k2 = jax.random.split(key)
    use_1x1 = (cin != cout) or (stride != 1)
    return {
        "layer1": init_residual(k1, cin, cout, use_1x1),
        "layer2": init_residual(k2, cout, cout, False),
    }


# ----------------------------------------------------------------------------
# Forward
# ----------------------------------------------------------------------------
def residual_forward(x_cf, p, stride, use_1x1):
    """x_cf: (Cin, N, H, W) float32, channel-major."""
    Cin, N, H, W = x_cf.shape
    Cout = p["w1"].shape[0]

    # conv1 (3x3, pad=1, stride) + bn1 + relu   (stats fused into the matmul)
    a1, (N, Ho, Wo) = im2col_t(x_cf.astype(jnp.bfloat16), 3, stride, 1)
    M = N * Ho * Wo
    Mp = _round_up(M, 128)
    a1 = _pad_lanes(a1, Mp)
    y1, s1, ss1 = conv_bn_stats(a1, p["w1"], p["b1"])
    sc1, sh1 = bn_scale_shift(s1, ss1, p["b1"], M, p["bn1_g"], p["bn1_b"])
    act1 = bn_relu(y1, sc1, sh1)                           # (Cout, Mp)
    act1_cf = act1[:, :M].reshape(Cout, N, Ho, Wo)

    # conv2 (3x3, pad=1, stride=1) + bn2
    a2, _ = im2col_t(act1_cf.astype(jnp.bfloat16), 3, 1, 1)
    a2 = _pad_lanes(a2, Mp)
    y2, s2, ss2 = conv_bn_stats(a2, p["w2"], p["b2"])
    sc2, sh2 = bn_scale_shift(s2, ss2, p["b2"], M, p["bn2_g"], p["bn2_b"])

    # bn2 normalize + shortcut add + relu, all in ONE elementwise pass
    if use_1x1:
        xs = x_cf[:, :, ::stride, ::stride].reshape(Cin, M)
        xs = _pad_lanes(xs, Mp)
        out = bn_relu(y2, sc2, sh2, shortcut=(xs, p["w3"], p["b3"]))
    else:
        assert stride == 1 and Cin == Cout, "identity shortcut needs stride=1, Cin==Cout"
        r = _pad_lanes(x_cf.reshape(Cin, M), Mp)
        out = bn_relu(y2, sc2, sh2, resid=r)
    return out[:, :M].reshape(Cout, N, Ho, Wo)


@functools.partial(jax.jit, static_argnames=("stride", "use_1x1"))
def res_block_forward(x_nchw, params, *, stride, use_1x1):
    # NCHW (PyTorch) -> channel-major (C, N, H, W) for lane-dense kernels.
    x_cf = jnp.transpose(x_nchw.astype(jnp.float32), (1, 0, 2, 3))
    x_cf = residual_forward(x_cf, params["layer1"], stride, use_1x1)
    x_cf = residual_forward(x_cf, params["layer2"], 1, False)
    return jnp.transpose(x_cf, (1, 0, 2, 3))               # back to NCHW


# ----------------------------------------------------------------------------
if __name__ == "__main__":
    key = jax.random.PRNGKey(0)
    in_ch, out_ch, stride = 4, 8, 1          # channel change => 1x1 shortcut in layer1
    use_1x1 = (in_ch != out_ch) or (stride != 1)
    params = init_res_block(key, in_ch, out_ch, stride)

    x = jax.random.normal(jax.random.fold_in(key, 123), (2, in_ch, 16, 16), jnp.float32)

    y = res_block_forward(x, params, stride=stride, use_1x1=use_1x1)
    jax.block_until_ready(y)
    assert y.shape == (2, out_ch, 16, 16)
    assert bool(jnp.all(jnp.isfinite(y)))
    print("KERNEL_OK")
</pallas_src>

<mosaic_0001>
module attributes {stable_mosaic.version = 11 : i64} {
  func.func @_conv_stats_kernel(%arg0: i32, %arg1: memref<8x36xbf16, #tpu.memory_space<vmem>>, %arg2: memref<8x1xf32, #tpu.memory_space<vmem>>, %arg3: memref<36x256xbf16, #tpu.memory_space<vmem>>, %arg4: memref<8x256xf32, #tpu.memory_space<vmem>>, %arg5: memref<1x8x1xf32, #tpu.memory_space<vmem>>, %arg6: memref<1x8x1xf32, #tpu.memory_space<vmem>>) attributes {dimension_semantics = [#tpu.dimension_semantics<parallel>], iteration_bounds = array<i64: 2>, scalar_prefetch = 0 : i64, scratch_operands = 0 : i64, tpu.core_type = #tpu.core_type<tc>, window_params = [{pipeline_mode = #tpu.pipeline_mode<synchronous>, transform_indices = @transform_0, window_bounds = array<i64: 8, 36>}, {pipeline_mode = #tpu.pipeline_mode<synchronous>, transform_indices = @transform_1, window_bounds = array<i64: 8, 1>}, {transform_indices = @transform_2, window_bounds = array<i64: 36, 256>}, {transform_indices = @transform_3, window_bounds = array<i64: 8, 256>}, {transform_indices = @transform_4, window_bounds = array<i64: 1, 8, 1>}, {transform_indices = @transform_5, window_bounds = array<i64: 1, 8, 1>}]} {
    %c0 = arith.constant 0 : index
    %c0_0 = arith.constant 0 : index
    %0 = vector.load %arg1[%c0, %c0_0] : memref<8x36xbf16, #tpu.memory_space<vmem>>, vector<8x36xbf16>
    %c0_1 = arith.constant 0 : index
    %c0_2 = arith.constant 0 : index
    %1 = vector.load %arg3[%c0_1, %c0_2] : memref<36x256xbf16, #tpu.memory_space<vmem>>, vector<36x256xbf16>
    %cst = arith.constant dense<0.000000e+00> : vector<8x256xf32>
    %2 = tpu.matmul %0, %1, %cst {dimension_numbers = #tpu.dot_dimension_numbers<[1], [0], [0], [1], [0, 0, 1, 1], [], []>} : vector<8x36xbf16>, vector<36x256xbf16>, vector<8x256xf32> -> vector<8x256xf32>
    %cst_3 = arith.constant dense<0.000000e+00> : vector<8xf32>
    %3 = vector.multi_reduction <add>, %2, %cst_3 [1] : vector<8x256xf32> to vector<8xf32>
    %4 = vector.shape_cast %3 : vector<8xf32> to vector<8x1xf32>
    %5 = vector.shape_cast %4 : vector<8x1xf32> to vector<1x8x1xf32>
    %c0_4 = arith.constant 0 : index
    %c0_5 = arith.constant 0 : index
    %c0_6 = arith.constant 0 : index
    %6 = vector.load %arg5[%c0_4, %c0_5, %c0_6] : memref<1x8x1xf32, #tpu.memory_space<vmem>>, vector<1x8x1xf32>
    tpu.vector_store %arg5[%c0_4, %c0_5, %c0_6], %5 {strides = array<i32>} : memref<1x8x1xf32, #tpu.memory_space<vmem>>, vector<1x8x1xf32>,
    %7 = arith.mulf %2, %2 : vector<8x256xf32>
    %cst_7 = arith.constant dense<0.000000e+00> : vector<8xf32>
    %8 = vector.multi_reduction <add>, %7, %cst_7 [1] : vector<8x256xf32> to vector<8xf32>
    %9 = vector.shape_cast %8 : vector<8xf32> to vector<8x1xf32>
    %10 = vector.shape_cast %9 : vector<8x1xf32> to vector<1x8x1xf32>
    %c0_8 = arith.constant 0 : index
    %c0_9 = arith.constant 0 : index
    %c0_10 = arith.constant 0 : index
    %11 = vector.load %arg6[%c0_8, %c0_9, %c0_10] : memref<1x8x1xf32, #tpu.memory_space<vmem>>, vector<1x8x1xf32>
    tpu.vector_store %arg6[%c0_8, %c0_9, %c0_10], %10 {strides = array<i32>} : memref<1x8x1xf32, #tpu.memory_space<vmem>>, vector<1x8x1xf32>,
    %c0_11 = arith.constant 0 : index
    %c0_12 = arith.constant 0 : index
    %12 = vector.load %arg2[%c0_11, %c0_12] : memref<8x1xf32, #tpu.memory_space<vmem>>, vector<8x1xf32>
    %13 = vector.broadcast %12 : vector<8x1xf32> to vector<8x256xf32>
    %14 = arith.addf %2, %13 : vector<8x256xf32>
    %c0_13 = arith.constant 0 : index
    %c0_14 = arith.constant 0 : index
    %15 = vector.load %arg4[%c0_13, %c0_14] : memref<8x256xf32, #tpu.memory_space<vmem>>, vector<8x256xf32>
    tpu.vector_store %arg4[%c0_13, %c0_14], %14 {strides = array<i32>} : memref<8x256xf32, #tpu.memory_space<vmem>>, vector<8x256xf32>,
    return
  }
  func.func @transform_0(%arg0: i32) -> (i32, i32) {
    %c0_i32 = arith.constant 0 : i32
    %c0_i32_0 = arith.constant 0 : i32
    %c0_i32_1 = arith.constant 0 : i32
    return %c0_i32, %c0_i32_0 : i32, i32
  }
  func.func @transform_1(%arg0: i32) -> (i32, i32) {
    %c0_i32 = arith.constant 0 : i32
    %c0_i32_0 = arith.constant 0 : i32
    %c0_i32_1 = arith.constant 0 : i32
    return %c0_i32, %c0_i32_0 : i32, i32
  }
  func.func @transform_2(%arg0: i32) -> (i32, i32) {
    %c0_i32 = arith.constant 0 : i32
    %c0_i32_0 = arith.constant 0 : i32
    return %c0_i32, %arg0 : i32, i32
  }
  func.func @transform_3(%arg0: i32) -> (i32, i32) {
    %c0_i32 = arith.constant 0 : i32
    %c0_i32_0 = arith.constant 0 : i32
    return %c0_i32, %arg0 : i32, i32
  }
  func.func @transform_4(%arg0: i32) -> (i32, i32, i32) {
    %c0_i32 = arith.constant 0 : i32
    %c0_i32_0 = arith.constant 0 : i32
    %c0_i32_1 = arith.constant 0 : i32
    return %arg0, %c0_i32, %c0_i32_0 : i32, i32, i32
  }
  func.func @transform_5(%arg0: i32) -> (i32, i32, i32) {
    %c0_i32 = arith.constant 0 : i32
    %c0_i32_0 = arith.constant 0 : i32
    %c0_i32_1 = arith.constant 0 : i32
    return %arg0, %c0_i32, %c0_i32_0 : i32, i32, i32
  }
}

module attributes {stable_mosaic.version = 11 : i64} {
  func.func @_bn_relu_kernel(%arg0: i32, %arg1: memref<8x256xf32, #tpu.memory_space<vmem>>, %arg2: memref<8x1xf32, #tpu.memory_space<vmem>>, %arg3: memref<8x1xf32, #tpu.memory_space<vmem>>, %arg4: memref<8x256xf32, #tpu.memory_space<vmem>>) attributes {dimension_semantics = [#tpu.dimension_semantics<parallel>], iteration_bounds = array<i64: 2>, scalar_prefetch = 0 : i64, scratch_operands = 0 : i64, tpu.core_type = #tpu.core_type<tc>, window_params = [{transform_indices = @transform_0, window_bounds = array<i64: 8, 256>}, {pipeline_mode = #tpu.pipeline_mode<synchronous>, transform_indices = @transform_1, window_bounds = array<i64: 8, 1>}, {pipeline_mode = #tpu.pipeline_mode<synchronous>, transform_indices = @transform_2, window_bounds = array<i64: 8, 1>}, {transform_indices = @transform_3, window_bounds = array<i64: 8, 256>}]} {
    %c0 = arith.constant 0 : index
    %c0_0 = arith.constant 0 : index
    %0 = vector.load %arg1[%c0, %c0_0] : memref<8x256xf32, #tpu.memory_space<vmem>>, vector<8x256xf32>
    %c0_1 = arith.constant 0 : index
    %c0_2 = arith.constant 0 : index
    %1 = vector.load %arg2[%c0_1, %c0_2] : memref<8x1xf32, #tpu.memory_space<vmem>>, vector<8x1xf32>
    %2 = vector.broadcast %1 : vector<8x1xf32> to vector<8x256xf32>
    %3 = arith.mulf %0, %2 : vector<8x256xf32>
    %c0_3 = arith.constant 0 : index
    %c0_4 = arith.constant 0 : index
    %4 = vector.load %arg3[%c0_3, %c0_4] : memref<8x1xf32, #tpu.memory_space<vmem>>, vector<8x1xf32>
    %5 = vector.broadcast %4 : vector<8x1xf32> to vector<8x256xf32>
    %6 = arith.addf %3, %5 : vector<8x256xf32>
    %cst = arith.constant 0.000000e+00 : f32
    %7 = vector.broadcast %cst : f32 to vector<8x256xf32>
    %8 = arith.maximumf %6, %7 : vector<8x256xf32>
    %c0_5 = arith.constant 0 : index
    %c0_6 = arith.constant 0 : index
    %9 = vector.load %arg4[%c0_5, %c0_6] : memref<8x256xf32, #tpu.memory_space<vmem>>, vector<8x256xf32>
    tpu.vector_store %arg4[%c0_5, %c0_6], %8 {strides = array<i32>} : memref<8x256xf32, #tpu.memory_space<vmem>>, vector<8x256xf32>,
    return
  }
  func.func @transform_0(%arg0: i32) -> (i32, i32) {
    %c0_i32 = arith.constant 0 : i32
    %c0_i32_0 = arith.constant 0 : i32
    return %c0_i32, %arg0 : i32, i32
  }
  func.func @transform_1(%arg0: i32) -> (i32, i32) {
    %c0_i32 = arith.constant 0 : i32
    %c0_i32_0 = arith.constant 0 : i32
    %c0_i32_1 = arith.constant 0 : i32
    return %c0_i32, %c0_i32_0 : i32, i32
  }
  func.func @transform_2(%arg0: i32) -> (i32, i32) {
    %c0_i32 = arith.constant 0 : i32
    %c0_i32_0 = arith.constant 0 : i32
    %c0_i32_1 = arith.constant 0 : i32
    return %c0_i32, %c0_i32_0 : i32, i32
  }
  func.func @transform_3(%arg0: i32) -> (i32, i32) {
    %c0_i32 = arith.constant 0 : i32
    %c0_i32_0 = arith.constant 0 : i32
    return %c0_i32, %arg0 : i32, i32
  }
}

module attributes {stable_mosaic.version = 11 : i64} {
  func.func @_conv_stats_kernel(%arg0: i32, %arg1: memref<8x72xbf16, #tpu.memory_space<vmem>>, %arg2: memref<8x1xf32, #tpu.memory_space<vmem>>, %arg3: memref<72x256xbf16, #tpu.memory_space<vmem>>, %arg4: memref<8x256xf32, #tpu.memory_space<vmem>>, %arg5: memref<1x8x1xf32, #tpu.memory_space<vmem>>, %arg6: memref<1x8x1xf32, #tpu.memory_space<vmem>>) attributes {dimension_semantics = [#tpu.dimension_semantics<parallel>], iteration_bounds = array<i64: 2>, scalar_prefetch = 0 : i64, scratch_operands = 0 : i64, tpu.core_type = #tpu.core_type<tc>, window_params = [{pipeline_mode = #tpu.pipeline_mode<synchronous>, transform_indices = @transform_0, window_bounds = array<i64: 8, 72>}, {pipeline_mode = #tpu.pipeline_mode<synchronous>, transform_indices = @transform_1, window_bounds = array<i64: 8, 1>}, {transform_indices = @transform_2, window_bounds = array<i64: 72, 256>}, {transform_indices = @transform_3, window_bounds = array<i64: 8, 256>}, {transform_indices = @transform_4, window_bounds = array<i64: 1, 8, 1>}, {transform_indices = @transform_5, window_bounds = array<i64: 1, 8, 1>}]} {
    %c0 = arith.constant 0 : index
    %c0_0 = arith.constant 0 : index
    %0 = vector.load %arg1[%c0, %c0_0] : memref<8x72xbf16, #tpu.memory_space<vmem>>, vector<8x72xbf16>
    %c0_1 = arith.constant 0 : index
    %c0_2 = arith.constant 0 : index
    %1 = vector.load %arg3[%c0_1, %c0_2] : memref<72x256xbf16, #tpu.memory_space<vmem>>, vector<72x256xbf16>
    %cst = arith.constant dense<0.000000e+00> : vector<8x256xf32>
    %2 = tpu.matmul %0, %1, %cst {dimension_numbers = #tpu.dot_dimension_numbers<[1], [0], [0], [1], [0, 0, 1, 1], [], []>} : vector<8x72xbf16>, vector<72x256xbf16>, vector<8x256xf32> -> vector<8x256xf32>
    %cst_3 = arith.constant dense<0.000000e+00> : vector<8xf32>
    %3 = vector.multi_reduction <add>, %2, %cst_3 [1] : vector<8x256xf32> to vector<8xf32>
    %4 = vector.shape_cast %3 : vector<8xf32> to vector<8x1xf32>
    %5 = vector.shape_cast %4 : vector<8x1xf32> to vector<1x8x1xf32>
    %c0_4 = arith.constant 0 : index
    %c0_5 = arith.constant 0 : index
    %c0_6 = arith.constant 0 : index
    %6 = vector.load %arg5[%c0_4, %c0_5, %c0_6] : memref<1x8x1xf32, #tpu.memory_space<vmem>>, vector<1x8x1xf32>
    tpu.vector_store %arg5[%c0_4, %c0_5, %c0_6], %5 {strides = array<i32>} : memref<1x8x1xf32, #tpu.memory_space<vmem>>, vector<1x8x1xf32>,
    %7 = arith.mulf %2, %2 : vector<8x256xf32>
    %cst_7 = arith.constant dense<0.000000e+00> : vector<8xf32>
    %8 = vector.multi_reduction <add>, %7, %cst_7 [1] : vector<8x256xf32> to vector<8xf32>
    %9 = vector.shape_cast %8 : vector<8xf32> to vector<8x1xf32>
    %10 = vector.shape_cast %9 : vector<8x1xf32> to vector<1x8x1xf32>
    %c0_8 = arith.constant 0 : index
    %c0_9 = arith.constant 0 : index
    %c0_10 = arith.constant 0 : index
    %11 = vector.load %arg6[%c0_8, %c0_9, %c0_10] : memref<1x8x1xf32, #tpu.memory_space<vmem>>, vector<1x8x1xf32>
    tpu.vector_store %arg6[%c0_8, %c0_9, %c0_10], %10 {strides = array<i32>} : memref<1x8x1xf32, #tpu.memory_space<vmem>>, vector<1x8x1xf32>,
    %c0_11 = arith.constant 0 : index
    %c0_12 = arith.constant 0 : index
    %12 = vector.load %arg2[%c0_11, %c0_12] : memref<8x1xf32, #tpu.memory_space<vmem>>, vector<8x1xf32>
    %13 = vector.broadcast %12 : vector<8x1xf32> to vector<8x256xf32>
    %14 = arith.addf %2, %13 : vector<8x256xf32>
    %c0_13 = arith.constant 0 : index
    %c0_14 = arith.constant 0 : index
    %15 = vector.load %arg4[%c0_13, %c0_14] : memref<8x256xf32, #tpu.memory_space<vmem>>, vector<8x256xf32>
    tpu.vector_store %arg4[%c0_13, %c0_14], %14 {strides = array<i32>} : memref<8x256xf32, #tpu.memory_space<vmem>>, vector<8x256xf32>,
    return
  }
  func.func @transform_0(%arg0: i32) -> (i32, i32) {
    %c0_i32 = arith.constant 0 : i32
    %c0_i32_0 = arith.constant 0 : i32
    %c0_i32_1 = arith.constant 0 : i32
    return %c0_i32, %c0_i32_0 : i32, i32
  }
  func.func @transform_1(%arg0: i32) -> (i32, i32) {
    %c0_i32 = arith.constant 0 : i32
    %c0_i32_0 = arith.constant 0 : i32
    %c0_i32_1 = arith.constant 0 : i32
    return %c0_i32, %c0_i32_0 : i32, i32
  }
  func.func @transform_2(%arg0: i32) -> (i32, i32) {
    %c0_i32 = arith.constant 0 : i32
    %c0_i32_0 = arith.constant 0 : i32
    return %c0_i32, %arg0 : i32, i32
  }
  func.func @transform_3(%arg0: i32) -> (i32, i32) {
    %c0_i32 = arith.constant 0 : i32
    %c0_i32_0 = arith.constant 0 : i32
    return %c0_i32, %arg0 : i32, i32
  }
  func.func @transform_4(%arg0: i32) -> (i32, i32, i32) {
    %c0_i32 = arith.constant 0 : i32
    %c0_i32_0 = arith.constant 0 : i32
    %c0_i32_1 = arith.constant 0 : i32
    return %arg0, %c0_i32, %c0_i32_0 : i32, i32, i32
  }
  func.func @transform_5(%arg0: i32) -> (i32, i32, i32) {
    %c0_i32 = arith.constant 0 : i32
    %c0_i32_0 = arith.constant 0 : i32
    %c0_i32_1 = arith.constant 0 : i32
    return %arg0, %c0_i32, %c0_i32_0 : i32, i32, i32
  }
}

module attributes {stable_mosaic.version = 11 : i64} {
  func.func @_bn_shortcut_relu_kernel(%arg0: i32, %arg1: memref<8x256xf32, #tpu.memory_space<vmem>>, %arg2: memref<8x1xf32, #tpu.memory_space<vmem>>, %arg3: memref<8x1xf32, #tpu.memory_space<vmem>>, %arg4: memref<4x256xf32, #tpu.memory_space<vmem>>, %arg5: memref<8x4xf32, #tpu.memory_space<vmem>>, %arg6: memref<8x1xf32, #tpu.memory_space<vmem>>, %arg7: memref<8x256xf32, #tpu.memory_space<vmem>>) attributes {dimension_semantics = [#tpu.dimension_semantics<parallel>], iteration_bounds = array<i64: 2>, scalar_prefetch = 0 : i64, scratch_operands = 0 : i64, tpu.core_type = #tpu.core_type<tc>, window_params = [{transform_indices = @transform_0, window_bounds = array<i64: 8, 256>}, {pipeline_mode = #tpu.pipeline_mode<synchronous>, transform_indices = @transform_1, window_bounds = array<i64: 8, 1>}, {pipeline_mode = #tpu.pipeline_mode<synchronous>, transform_indices = @transform_2, window_bounds = array<i64: 8, 1>}, {transform_indices = @transform_3, window_bounds = array<i64: 4, 256>}, {pipeline_mode = #tpu.pipeline_mode<synchronous>, transform_indices = @transform_4, window_bounds = array<i64: 8, 4>}, {pipeline_mode = #tpu.pipeline_mode<synchronous>, transform_indices = @transform_5, window_bounds = array<i64: 8, 1>}, {transform_indices = @transform_6, window_bounds = array<i64: 8, 256>}]} {
    %c0 = arith.constant 0 : index
    %c0_0 = arith.constant 0 : index
    %0 = vector.load %arg5[%c0, %c0_0] : memref<8x4xf32, #tpu.memory_space<vmem>>, vector<8x4xf32>
    %c0_1 = arith.constant 0 : index
    %c0_2 = arith.constant 0 : index
    %1 = vector.load %arg4[%c0_1, %c0_2] : memref<4x256xf32, #tpu.memory_space<vmem>>, vector<4x256xf32>
    %cst = arith.constant dense<0.000000e+00> : vector<8x256xf32>
    %2 = tpu.matmul %0, %1, %cst {dimension_numbers = #tpu.dot_dimension_numbers<[1], [0], [0], [1], [0, 0, 1, 1], [], []>} : vector<8x4xf32>, vector<4x256xf32>, vector<8x256xf32> -> vector<8x256xf32>
    %c0_3 = arith.constant 0 : index
    %c0_4 = arith.constant 0 : index
    %3 = vector.load %arg6[%c0_3, %c0_4] : memref<8x1xf32, #tpu.memory_space<vmem>>, vector<8x1xf32>
    %4 = vector.broadcast %3 : vector<8x1xf32> to vector<8x256xf32>
    %5 = arith.addf %2, %4 : vector<8x256xf32>
    %c0_5 = arith.constant 0 : index
    %c0_6 = arith.constant 0 : index
    %6 = vector.load %arg1[%c0_5, %c0_6] : memref<8x256xf32, #tpu.memory_space<vmem>>, vector<8x256xf32>
    %c0_7 = arith.constant 0 : index
    %c0_8 = arith.constant 0 : index
    %7 = vector.load %arg2[%c0_7, %c0_8] : memref<8x1xf32, #tpu.memory_space<vmem>>, vector<8x1xf32>
    %8 = vector.broadcast %7 : vector<8x1xf32> to vector<8x256xf32>
    %9 = arith.mulf %6, %8 : vector<8x256xf32>
    %c0_9 = arith.constant 0 : index
    %c0_10 = arith.constant 0 : index
    %10 = vector.load %arg3[%c0_9, %c0_10] : memref<8x1xf32, #tpu.memory_space<vmem>>, vector<8x1xf32>
    %11 = vector.broadcast %10 : vector<8x1xf32> to vector<8x256xf32>
    %12 = arith.addf %9, %11 : vector<8x256xf32>
    %13 = arith.addf %12, %5 : vector<8x256xf32>
    %cst_11 = arith.constant 0.000000e+00 : f32
    %14 = vector.broadcast %cst_11 : f32 to vector<8x256xf32>
    %15 = arith.maximumf %13, %14 : vector<8x256xf32>
    %c0_12 = arith.constant 0 : index
    %c0_13 = arith.constant 0 : index
    %16 = vector.load %arg7[%c0_12, %c0_13] : memref<8x256xf32, #tpu.memory_space<vmem>>, vector<8x256xf32>
    tpu.vector_store %arg7[%c0_12, %c0_13], %15 {strides = array<i32>} : memref<8x256xf32, #tpu.memory_space<vmem>>, vector<8x256xf32>,
    return
  }
  func.func @transform_0(%arg0: i32) -> (i32, i32) {
    %c0_i32 = arith.constant 0 : i32
    %c0_i32_0 = arith.constant 0 : i32
    return %c0_i32, %arg0 : i32, i32
  }
  func.func @transform_1(%arg0: i32) -> (i32, i32) {
    %c0_i32 = arith.constant 0 : i32
    %c0_i32_0 = arith.constant 0 : i32
    %c0_i32_1 = arith.constant 0 : i32
    return %c0_i32, %c0_i32_0 : i32, i32
  }
  func.func @transform_2(%arg0: i32) -> (i32, i32) {
    %c0_i32 = arith.constant 0 : i32
    %c0_i32_0 = arith.constant 0 : i32
    %c0_i32_1 = arith.constant 0 : i32
    return %c0_i32, %c0_i32_0 : i32, i32
  }
  func.func @transform_3(%arg0: i32) -> (i32, i32) {
    %c0_i32 = arith.constant 0 : i32
    %c0_i32_0 = arith.constant 0 : i32
    return %c0_i32, %arg0 : i32, i32
  }
  func.func @transform_4(%arg0: i32) -> (i32, i32) {
    %c0_i32 = arith.constant 0 : i32
    %c0_i32_0 = arith.constant 0 : i32
    %c0_i32_1 = arith.constant 0 : i32
    return %c0_i32, %c0_i32_0 : i32, i32
  }
  func.func @transform_5(%arg0: i32) -> (i32, i32) {
    %c0_i32 = arith.constant 0 : i32
    %c0_i32_0 = arith.constant 0 : i32
    %c0_i32_1 = arith.constant 0 : i32
    return %c0_i32, %c0_i32_0 : i32, i32
  }
  func.func @transform_6(%arg0: i32) -> (i32, i32) {
    %c0_i32 = arith.constant 0 : i32
    %c0_i32_0 = arith.constant 0 : i32
    return %c0_i32, %arg0 : i32, i32
  }
}

module attributes {stable_mosaic.version = 11 : i64} {
  func.func @_bn_add_relu_kernel(%arg0: i32, %arg1: memref<8x256xf32, #tpu.memory_space<vmem>>, %arg2: memref<8x1xf32, #tpu.memory_space<vmem>>, %arg3: memref<8x1xf32, #tpu.memory_space<vmem>>, %arg4: memref<8x256xf32, #tpu.memory_space<vmem>>, %arg5: memref<8x256xf32, #tpu.memory_space<vmem>>) attributes {dimension_semantics = [#tpu.dimension_semantics<parallel>], iteration_bounds = array<i64: 2>, scalar_prefetch = 0 : i64, scratch_operands = 0 : i64, tpu.core_type = #tpu.core_type<tc>, window_params = [{transform_indices = @transform_0, window_bounds = array<i64: 8, 256>}, {pipeline_mode = #tpu.pipeline_mode<synchronous>, transform_indices = @transform_1, window_bounds = array<i64: 8, 1>}, {pipeline_mode = #tpu.pipeline_mode<synchronous>, transform_indices = @transform_2, window_bounds = array<i64: 8, 1>}, {transform_indices = @transform_3, window_bounds = array<i64: 8, 256>}, {transform_indices = @transform_4, window_bounds = array<i64: 8, 256>}]} {
    %c0 = arith.constant 0 : index
    %c0_0 = arith.constant 0 : index
    %0 = vector.load %arg1[%c0, %c0_0] : memref<8x256xf32, #tpu.memory_space<vmem>>, vector<8x256xf32>
    %c0_1 = arith.constant 0 : index
    %c0_2 = arith.constant 0 : index
    %1 = vector.load %arg2[%c0_1, %c0_2] : memref<8x1xf32, #tpu.memory_space<vmem>>, vector<8x1xf32>
    %2 = vector.broadcast %1 : vector<8x1xf32> to vector<8x256xf32>
    %3 = arith.mulf %0, %2 : vector<8x256xf32>
    %c0_3 = arith.constant 0 : index
    %c0_4 = arith.constant 0 : index
    %4 = vector.load %arg3[%c0_3, %c0_4] : memref<8x1xf32, #tpu.memory_space<vmem>>, vector<8x1xf32>
    %5 = vector.broadcast %4 : vector<8x1xf32> to vector<8x256xf32>
    %6 = arith.addf %3, %5 : vector<8x256xf32>
    %c0_5 = arith.constant 0 : index
    %c0_6 = arith.constant 0 : index
    %7 = vector.load %arg4[%c0_5, %c0_6] : memref<8x256xf32, #tpu.memory_space<vmem>>, vector<8x256xf32>
    %8 = arith.addf %6, %7 : vector<8x256xf32>
    %cst = arith.constant 0.000000e+00 : f32
    %9 = vector.broadcast %cst : f32 to vector<8x256xf32>
    %10 = arith.maximumf %8, %9 : vector<8x256xf32>
    %c0_7 = arith.constant 0 : index
    %c0_8 = arith.constant 0 : index
    %11 = vector.load %arg5[%c0_7, %c0_8] : memref<8x256xf32, #tpu.memory_space<vmem>>, vector<8x256xf32>
    tpu.vector_store %arg5[%c0_7, %c0_8], %10 {strides = array<i32>} : memref<8x256xf32, #tpu.memory_space<vmem>>, vector<8x256xf32>,
    return
  }
  func.func @transform_0(%arg0: i32) -> (i32, i32) {
    %c0_i32 = arith.constant 0 : i32
    %c0_i32_0 = arith.constant 0 : i32
    return %c0_i32, %arg0 : i32, i32
  }
  func.func @transform_1(%arg0: i32) -> (i32, i32) {
    %c0_i32 = arith.constant 0 : i32
    %c0_i32_0 = arith.constant 0 : i32
    %c0_i32_1 = arith.constant 0 : i32
    return %c0_i32, %c0_i32_0 : i32, i32
  }
  func.func @transform_2(%arg0: i32) -> (i32, i32) {
    %c0_i32 = arith.constant 0 : i32
    %c0_i32_0 = arith.constant 0 : i32
    %c0_i32_1 = arith.constant 0 : i32
    return %c0_i32, %c0_i32_0 : i32, i32
  }
  func.func @transform_3(%arg0: i32) -> (i32, i32) {
    %c0_i32 = arith.constant 0 : i32
    %c0_i32_0 = arith.constant 0 : i32
    return %c0_i32, %arg0 : i32, i32
  }
  func.func @transform_4(%arg0: i32) -> (i32, i32) {
    %c0_i32 = arith.constant 0 : i32
    %c0_i32_0 = arith.constant 0 : i32
    return %c0_i32, %arg0 : i32, i32
  }
}

</mosaic_0001>

<bundles_post_ra>
// kernel: res_block_forward.9
= control target key start
LH: loop header
LB: loop body
LE: loop exit
PB: predicated region body
PF: predicated region fallthrough
CT: control target
= control target key end

     0   :  { %s302_s12 = smov 0   ;;  %s325_s0 = inlined_call_operand.vmem [shape: f32[8,512], index: 0, kind: input, shape index: {}]   ;;  %s326_s1 = inlined_call_operand.vmem [shape: f32[8,1], index: 1, kind: input, shape index: {}]   ;;  %s327_s2 = inlined_call_operand.vmem [shape: f32[8,1], index: 2, kind: input, shape index: {}]   ;;  %s328_s3 = inlined_call_operand.vmem [shape: f32[8,512], index: 3, kind: output, shape index: {}]  }
   0x1 LB: > { %s252_s13 = sadd.s32 4294967295, %s279_s12   ;;  %p256_p0 = scmp.ge.s32.totalorder %s279_s12, 1  ;;  %s279_s12 = sphi %s302_s12, %s13_s12  }
   0x2   : > { %p138_p1 = scmp.lt.s32.totalorder %s279_s12, 3 }
   0x4   : > { %p139_p2 = pnand %p256_p0, %p138_p1 }
   0x5   : > { %s257_s18 = sshll.u32 (!%p139_p2), %s252_s13, 1 }
   0x6   : > { %142 = sbr.rel (%p139_p2) target bundleno = 142 (0x8e), region = 32  ;;  %p163_p3 = scmp.lt.s32.totalorder (!%p139_p2), %s257_s18, 3 }
   0xb   : > { %v176_v0 = vld [vmem:[%s326_s1] sm:$0xff]  ;;  %v281_v1 = vmov 0   ;;  %s330_s18 = smov (!%p163_p3, %s257_s18), 3 }
   0xc   : > { %272 = vset.pattern.permute.xlu0 %v281_v1  ;;  %v184_v2 = vld [vmem:[%s327_s2] sm:$0xff]  ;;  %s258_s19 = sshll.u32 %s330_s18, 3 }
   0xd   : > { %179 = vperm.xlu0 %272, %v176_v0   ;;  %s166_s22 = scalar_lea.vmem %s325_s0, %s258_s19  ;;  %s172_s25 = scalar_lea.vmem %s328_s3, %s258_s19 }
   0xe   : > { %v174_v4 = vld [vmem:[%s166_s22] sm:$0xff]  ;;  %v175_v5 = vld [vmem:[%s166_s22 + $0x8] sm:$0xff] }
  0x15   : > { %187 = vperm.xlu0 %272, %v184_v2  }
  0x7f   : > { %v180_v3 = vpop.permute.xlu0 %179 }
  0x80   : > { %v182_v6 = vmul.f32 %v180_v3, %v174_v4  ;;  %v183_v7 = vmul.f32 %v180_v3, %v175_v5 }
  0x87   : > { %v188_v8 = vpop.permute.xlu0 %187 }
  0x88   : > { %v190_v9 = vadd.f32 %v188_v8, %v182_v6  ;;  %v191_v10 = vadd.f32 %v188_v8, %v183_v7 }
  0x8a   : > { %v192_v11 = vmax.f32 %v190_v9, 0.0  ;;  %v193_v12 = vmax.f32 %v191_v10, 0.0 }
  0x8c   : > { %194 = vst [vmem:[%s172_s25] sm:$0xff] %v192_v11 }
  0x8d   : > { %195 = vst [vmem:[%s172_s25 + $0x8] sm:$0xff] %v193_v12 }
  0x8e PF: > { %s13_s12 = sadd.s32 1, %s279_s12  }
  0x8f   : > { %p10_p4 = scmp.ge.s32.totalorder %s13_s12, 4  }
  0x91   :  { %12 = sbr.rel (!%p10_p4) target bundleno = 1 (0x1), region = 62 }

// kernel: res_block_forward.8
= control target key start
LH: loop header
LB: loop body
LE: loop exit
PB: predicated region body
PF: predicated region fallthrough
CT: control target
= control target key end

     0   :  { %s633_s18 = smov 0   ;;  %s635_s19 = smov 0   ;;  %s700_s0 = inlined_call_operand.vmem [shape: bf16[8,36], index: 0, kind: input, shape index: {}]   ;;  %s701_s1 = inlined_call_operand.vmem [shape: f32[8,1], index: 1, kind: input, shape index: {}]   ;;  %s702_s2 = inlined_call_operand.vmem [shape: bf16[36,512], index: 2, kind: input, shape index: {}]   ;;  %s703_s3 = inlined_call_operand.vmem [shape: f32[8,512], index: 3, kind: output, shape index: {0}]   ;;  %s704_s4 = inlined_call_operand.vmem [shape: f32[2,8,1], index: 4, kind: output, shape index: {1}]   ;;  %s705_s5 = inlined_call_operand.vmem [shape: f32[2,8,1], index: 5, kind: output, shape index: {2}]  }
   0x1   :  { %s637_s20 = smov 0  }
   0x2 LB: > { %s649_s21 = sadd.s32 4294967295, %s600_s20   ;;  %s652_s22 = sadd.s32 1, %s600_s20   ;;  %s600_s20 = sphi %s637_s20, %s708_s20   ;;  %s596_s19 = sphi %s635_s19, %s707_s19   ;;  %s592_s18 = sphi %s633_s18, %s706_s18  }
   0x3   : > { %s62_s23 = ssub.s32 %s600_s20, %s652_s22  ;;  %s65_s24 = sadd.s32 1, %s596_s19 }
   0x4   : > { %p63_p0 = scmp.eq.s32.totalorder %s62_s23, 0  ;;  %p72_p1 = scmp.ne.s32.totalorder %s596_s19, %s592_s18 }
   0x5   : > { %p73_p2 = scmp.eq.s32.totalorder %s600_s20, 0  ;;  %p517_p4 = scmp.ge.s32.totalorder %s600_s20, 2 }
   0x6   : > { %s661_s25 = scalar_select %p63_p0, %s596_s19, %s65_s24  }
   0x7   : > { %p74_p3 = por %p73_p2, %p72_p1  ;;  %182 = sbr.rel (%p517_p4) target bundleno = 21 (0x15), region = 24 }
   0xc   : > { %185 = sbr.rel (!%p74_p3) target bundleno = 21 (0x15), region = 28  ;;  %s187_s26 = sand.u32 (%p74_p3), 1, %s596_s19  }
   0xd   : > { %s545_s27 = sshll.u32 (%p74_p3), %s600_s20, 3  ;;  %s550_s28 = smul.u32 (%p74_p3), 40, %s187_s26 }
   0xe   : > { %s192_s6 = scalar_lea.vmem (%p74_p3), %s702_s2, %s545_s27 }
   0xf   : > { %v229_v0 = vld [vmem:[%s192_s6] sm:$0xff] (%p74_p3)  ;;  %v231_v1 = vld [vmem:[%s192_s6 + $0x10] sm:$0xff] (%p74_p3)  ;;  %s189_s7 = scalar_lea.vmem (%p74_p3), [#allocation2], %s550_s28 }
  0x10   : > { %v233_v2 = vld [vmem:[%s192_s6 + $0x20] sm:$0xff] (%p74_p3)  ;;  %230 = vst [vmem:[%s189_s7] sm:$0xff] (%p74_p3), %v229_v0  ;;  %v235_v3 = vld [vmem:[%s192_s6 + $0x30] sm:$0xff] (%p74_p3) }
  0x11   : > { %232 = vst [vmem:[%s189_s7 + $0x8] sm:$0xff] %v231_v1  ;;  %v237_v4 = vld [vmem:[%s192_s6 + $0x40] sm:$0xff] }
  0x12   : > { %234 = vst [vmem:[%s189_s7 + $0x10] sm:$0xff] %v233_v2 }
  0x13   : > { %236 = vst [vmem:[%s189_s7 + $0x18] sm:$0xff] %v235_v3 }
  0x14   : > { %238 = vst [vmem:[%s189_s7 + $0x20] sm:$0xff] %v237_v4 }
  0x15 PF: > { %p520_p5 = scmp.ge.s32.totalorder %s600_s20, 1  ;;  %p243_p6 = scmp.lt.s32.totalorder %s600_s20, 3 }
  0x17   : > { %p244_p7 = pnand %p520_p5, %p243_p6 }
  0x18   : > { %s250_s8 = sand.u32 (!%p244_p7), 1, %s592_s18   ;;  %s521_s15 = sshll.u32 (!%p244_p7), %s649_s21, 1 }
  0x19   : > { %247 = sbr.rel (%p244_p7) target bundleno = 296 (0x128), region = 66  ;;  %p287_p8 = scmp.lt.s32.totalorder (!%p244_p7), %s521_s15, 3 }
  0x1a   : > { %s551_s9 = smul.u32 (!%p244_p7), 40, %s250_s8  ;;  %p292_p9 = scmp.lt.s32.totalorder (!%p244_p7), %s649_s21, 1 }
  0x1c   : > { %s252_s12 = scalar_lea.vmem (!%p244_p7), [#allocation2], %s551_s9 }
  0x1e   : > { %v602_v5 = vmov 0   ;;  %v380_v6 = vld [vmem:[%s701_s1] sm:$0xff]  ;;  %vm336_vm0 = vcmask 1041408   ;;  %v535_v10 = vld [vmem:[%s252_s12 + $0x10] sm:$0xf]  ;;  %vm332_vm1 = vcmask 293888  }
  0x1f   : > { %577 = vset.pattern.permute.xlu0 %v602_v5  ;;  %v306_v7 = vld [vmem:[%s252_s12 + $0x20] sm:$0x33]  ;;  %v549_v13 = vld [vmem:[%s252_s12 + $0x14] sm:$0xf0]  ;;  %v548_v14 = vld [vmem:[%s252_s12 + $0x14] sm:$0xf] }
  0x20   : > { %383 = vperm.xlu0 %577, %v380_v6   ;;  %v320_v8 = vunpack.c.l.b16 %v306_v7  ;;  %v321_v9 = vunpack.c.h.b16 %v306_v7  ;;  %v537_v15 = vld [vmem:[%s252_s12 + $0x18] sm:$0xf0]  ;;  %v536_v18 = vor.u32 %v549_v13, %v535_v10  ;;  %v527_v20 = vld [vmem:[%s252_s12] sm:$0xf]  ;;  %v547_v21 = vld [vmem:[%s252_s12 + $0x4] sm:$0xf0] }
  0x21   : > { %v540_v19 = vor.u32 %v548_v14, %v537_v15  ;;  %v546_v22 = vld [vmem:[%s252_s12 + $0x4] sm:$0xf]  ;;  %v529_v23 = vld [vmem:[%s252_s12 + $0x8] sm:$0xf0]  ;;  %v528_v24 = vor.u32 %v547_v21, %v527_v20  ;;  %v301_v26 = vld [vmem:[%s700_s0] sm:$0xf] }
  0x22   : > { %v326_v11 = vpack.c.b16 %v320_v8, %v320_v8  ;;  %v327_v12 = vpack.c.b16 %v321_v9, %v321_v9  ;;  %v532_v25 = vor.u32 %v546_v22, %v529_v23  ;;  %s710_s15 = smov (!%p287_p8, %s521_s15), 3  ;;  %s712_s21 = smov (!%p292_p9, %s649_s21), 1  ;;  %vm372_vm2 = vcmask 7168  }
  0x23   : > { %s522_s16 = sshll.u32 %s710_s15, 3  ;;  %s523_s23 = sshll.u32 %s712_s21, 3 }
  0x24   : > { %v338_v16 = vsel %vm336_vm0, %v326_v11, 0  ;;  %v341_v17 = vsel %vm336_vm0, %v327_v12, 0  ;;  %s290_s20 = scalar_lea.vmem %s703_s3, %s522_s16  ;;  %s295_s27 = scalar_lea.vmem %s704_s4, %s523_s23 }
  0x25   : > { %348 = vmatpush.bf16.msra.mxu0 %v338_v16  ;;  %361 = vmatpush.bf16.msra.mxu1 %v341_v17  ;;  %s299_s30 = scalar_lea.vmem %s705_s5, %s523_s23 }
  0x29   : > { %349 = vmatpush.bf16.msra.mxu0 %v536_v18  ;;  %362 = vmatpush.bf16.msra.mxu1 %v540_v19 }
  0x2d   : > { %350 = vmatpush.bf16.msra.mxu0 %v528_v24  ;;  %363 = vmatpush.bf16.msra.mxu1 %v532_v25 }
  0x30   : > { %541 = vmatmul.msk.bf16.vlgmr.msra.gmra.mxu0 %vm332_vm1, %v301_v26  ;;  %542 = vmatmul.msk.bf16.vlgmr.msra.gmra.mxu1 %vm332_vm1, %v301_v26 }
  0x92   : > { %v384_v27 = vpop.permute.xlu0 %383 }
  0xad   : > { %v352_v28 = vpop.f32.mrf.mxu0  ;;  %v365_v29 = vpop.f32.mrf.mxu1 }
  0xae   : > { %v386_v30 = vadd.f32 %v384_v27, %v352_v28  ;;  %v387_v31 = vadd.f32 %v384_v27, %v365_v29  ;;  %v369_v32 = vadd.f32 %v365_v29, %v352_v28  ;;  %v374_v33 = vmul.f32 %v352_v28, %v352_v28 }
  0xaf   : > { %v375_v34 = vmul.f32 %v365_v29, %v365_v29 }
  0xb0   : > { %388 = vst [vmem:[%s290_s20] sm:$0xff] %v386_v30  ;;  %370 = vadd.xlane.f32.xlu0 %v369_v32 }
  0xb1   : > { %389 = vst [vmem:[%s290_s20 + $0x8] sm:$0xff] %v387_v31  ;;  %v376_v35 = vadd.f32 %v375_v34, %v374_v33 }
  0xb3   : > { %377 = vadd.xlane.f32.xlu1 %v376_v35 }
  0xb5   : > { %v354_v36 = vpop.f32.mrf.mxu0  ;;  %v367_v37 = vpop.f32.mrf.mxu1 }
 0x123   : > { %v371_v38 = vpop.xlane.xlu0 %370 }
 0x124   : > { %373 = vst.msk [vmem:[%s295_s27] sm:$0xff] %vm372_vm2, %v371_v38 }
 0x126   : > { %v378_v39 = vpop.xlane.xlu1 %377 }
 0x127   : > { %379 = vst.msk [vmem:[%s299_s30] sm:$0xff] %vm372_vm2, %v378_v39 }
 0x128 PF: > { %p13_p10 = scmp.ge.s32.totalorder %s652_s22, 4   ;;  %s706_s18 = smov %s596_s19 }
 0x129   : > { %s707_s19 = smov %s661_s25  ;;  %s708_s20 = smov %s652_s22 }
 0x12a   :  { %15 = sbr.rel (!%p13_p10) target bundleno = 2 (0x2), region = 129 }

// kernel: res_block_forward.10
= control target key start
LH: loop header
LB: loop body
LE: loop exit
PB: predicated region body
PF: predicated region fallthrough
CT: control target
= control target key end

     0   :  { %s693_s18 = smov 0   ;;  %s695_s19 = smov 0   ;;  %s779_s0 = inlined_call_operand.vmem [shape: bf16[8,72], index: 0, kind: input, shape index: {}]   ;;  %s780_s1 = inlined_call_operand.vmem [shape: f32[8,1], index: 1, kind: input, shape index: {}]   ;;  %s781_s2 = inlined_call_operand.vmem [shape: bf16[72,512], index: 2, kind: input, shape index: {}]   ;;  %s782_s3 = inlined_call_operand.vmem [shape: f32[8,512], index: 3, kind: output, shape index: {0}]   ;;  %s783_s4 = inlined_call_operand.vmem [shape: f32[2,8,1], index: 4, kind: output, shape index: {1}]   ;;  %s784_s5 = inlined_call_operand.vmem [shape: f32[2,8,1], index: 5, kind: output, shape index: {2}]  }
   0x1   :  { %s697_s20 = smov 0  }
   0x2 LB: > { %s709_s21 = sadd.s32 4294967295, %s660_s20   ;;  %s712_s22 = sadd.s32 1, %s660_s20   ;;  %s660_s20 = sphi %s697_s20, %s787_s20   ;;  %s656_s19 = sphi %s695_s19, %s786_s19   ;;  %s652_s18 = sphi %s693_s18, %s785_s18  }
   0x3   : > { %s62_s23 = ssub.s32 %s660_s20, %s712_s22  ;;  %s65_s24 = sadd.s32 1, %s656_s19 }
   0x4   : > { %p63_p0 = scmp.eq.s32.totalorder %s62_s23, 0  ;;  %p72_p1 = scmp.ne.s32.totalorder %s656_s19, %s652_s18 }
   0x5   : > { %p73_p2 = scmp.eq.s32.totalorder %s660_s20, 0  ;;  %p557_p4 = scmp.ge.s32.totalorder %s660_s20, 2 }
   0x6   : > { %s721_s25 = scalar_select %p63_p0, %s656_s19, %s65_s24  }
   0x7   : > { %p74_p3 = por %p73_p2, %p72_p1  ;;  %182 = sbr.rel (%p557_p4) target bundleno = 25 (0x19), region = 24 }
   0xc   : > { %185 = sbr.rel (!%p74_p3) target bundleno = 25 (0x19), region = 28  ;;  %s187_s26 = sand.u32 (%p74_p3), 1, %s656_s19  }
   0xd   : > { %s601_s27 = sshll.u32 (%p74_p3), %s660_s20, 3  ;;  %s610_s28 = smul.u32 (%p74_p3), 72, %s187_s26 }
   0xe   : > { %s192_s6 = scalar_lea.vmem (%p74_p3), %s781_s2, %s601_s27 }
   0xf   : > { %v237_v0 = vld [vmem:[%s192_s6] sm:$0xff] (%p74_p3)  ;;  %v239_v1 = vld [vmem:[%s192_s6 + $0x10] sm:$0xff] (%p74_p3)  ;;  %s189_s7 = scalar_lea.vmem (%p74_p3), [#allocation2], %s610_s28 }
  0x10   : > { %v241_v2 = vld [vmem:[%s192_s6 + $0x20] sm:$0xff] (%p74_p3)  ;;  %238 = vst [vmem:[%s189_s7] sm:$0xff] (%p74_p3), %v237_v0  ;;  %v243_v3 = vld [vmem:[%s192_s6 + $0x30] sm:$0xff] (%p74_p3) }
  0x11   : > { %240 = vst [vmem:[%s189_s7 + $0x8] sm:$0xff] %v239_v1  ;;  %v245_v4 = vld [vmem:[%s192_s6 + $0x40] sm:$0xff]  ;;  %v247_v5 = vld [vmem:[%s192_s6 + $0x50] sm:$0xff] }
  0x12   : > { %242 = vst [vmem:[%s189_s7 + $0x10] sm:$0xff] %v241_v2  ;;  %v249_v6 = vld [vmem:[%s192_s6 + $0x60] sm:$0xff]  ;;  %v251_v7 = vld [vmem:[%s192_s6 + $0x70] sm:$0xff] }
  0x13   : > { %244 = vst [vmem:[%s189_s7 + $0x18] sm:$0xff] %v243_v3  ;;  %v253_v8 = vld [vmem:[%s192_s6 + $0x80] sm:$0xff] }
  0x14   : > { %246 = vst [vmem:[%s189_s7 + $0x20] sm:$0xff] %v245_v4 }
  0x15   : > { %248 = vst [vmem:[%s189_s7 + $0x28] sm:$0xff] %v247_v5 }
  0x16   : > { %250 = vst [vmem:[%s189_s7 + $0x30] sm:$0xff] %v249_v6 }
  0x17   : > { %252 = vst [vmem:[%s189_s7 + $0x38] sm:$0xff] %v251_v7 }
  0x18   : > { %254 = vst [vmem:[%s189_s7 + $0x40] sm:$0xff] %v253_v8 }
  0x19 PF: > { %p560_p5 = scmp.ge.s32.totalorder %s660_s20, 1  ;;  %p259_p6 = scmp.lt.s32.totalorder %s660_s20, 3 }
  0x1b   : > { %p260_p7 = pnand %p560_p5, %p259_p6 }
  0x1c   : > { %s266_s8 = sand.u32 (!%p260_p7), 1, %s652_s18   ;;  %s561_s15 = sshll.u32 (!%p260_p7), %s709_s21, 1 }
  0x1d   : > { %263 = sbr.rel (%p260_p7) target bundleno = 308 (0x134), region = 66  ;;  %p303_p8 = scmp.lt.s32.totalorder (!%p260_p7), %s561_s15, 3 }
  0x1e   : > { %s611_s9 = smul.u32 (!%p260_p7), 72, %s266_s8  ;;  %p308_p9 = scmp.lt.s32.totalorder (!%p260_p7), %s709_s21, 1 }
  0x20   : > { %s735_s12 = scalar_lea.vmem (!%p260_p7), [#allocation2], %s611_s9 }
  0x22   : > { %v662_v9 = vmov 0   ;;  %v420_v10 = vld [vmem:[%s780_s1] sm:$0xff]  ;;  %vm376_vm0 = vcmask 1043456   ;;  %v591_v14 = vld [vmem:[%s735_s12 + $0x30] sm:$0xf]  ;;  %vm372_vm1 = vcmask 588800  }
  0x23   : > { %637 = vset.pattern.permute.xlu0 %v662_v9  ;;  %v326_v11 = vld [vmem:[%s735_s12 + $0x40] sm:$0xff]  ;;  %v609_v17 = vld [vmem:[%s735_s12 + $0x34] sm:$0xf0]  ;;  %v608_v18 = vld [vmem:[%s735_s12 + $0x34] sm:$0xf]  ;;  %s789_s15 = smov (!%p303_p8, %s561_s15), 3 }
  0x24   : > { %423 = vperm.xlu0 %637, %v420_v10   ;;  %v352_v12 = vunpack.c.l.b16 %v326_v11  ;;  %v353_v13 = vunpack.c.h.b16 %v326_v11  ;;  %v593_v19 = vld [vmem:[%s735_s12 + $0x38] sm:$0xf0]  ;;  %v592_v22 = vor.u32 %v609_v17, %v591_v14  ;;  %v583_v24 = vld [vmem:[%s735_s12 + $0x20] sm:$0xf]  ;;  %v607_v25 = vld [vmem:[%s735_s12 + $0x24] sm:$0xf0] }
  0x25   : > { %v596_v23 = vor.u32 %v608_v18, %v593_v19  ;;  %v606_v26 = vld [vmem:[%s735_s12 + $0x24] sm:$0xf]  ;;  %v585_v27 = vld [vmem:[%s735_s12 + $0x28] sm:$0xf0]  ;;  %v584_v28 = vor.u32 %v607_v25, %v583_v24  ;;  %v575_v30 = vld [vmem:[%s735_s12 + $0x10] sm:$0xf] }
  0x26   : > { %v362_v15 = vpack.c.b16 %v352_v12, %v352_v12  ;;  %v363_v16 = vpack.c.b16 %v353_v13, %v353_v13  ;;  %v588_v29 = vor.u32 %v606_v26, %v585_v27  ;;  %v605_v31 = vld [vmem:[%s735_s12 + $0x14] sm:$0xf0]  ;;  %v604_v32 = vld [vmem:[%s735_s12 + $0x14] sm:$0xf]  ;;  %v577_v33 = vld [vmem:[%s735_s12 + $0x18] sm:$0xf0] }
  0x27   : > { %v576_v34 = vor.u32 %v605_v31, %v575_v30  ;;  %v580_v35 = vor.u32 %v604_v32, %v577_v33  ;;  %v567_v36 = vld [vmem:[%s735_s12] sm:$0xf]  ;;  %v603_v37 = vld [vmem:[%s735_s12 + $0x4] sm:$0xf0]  ;;  %v602_v38 = vld [vmem:[%s735_s12 + $0x4] sm:$0xf] }
  0x28   : > { %v378_v20 = vsel %vm376_vm0, %v362_v15, 0  ;;  %v381_v21 = vsel %vm376_vm0, %v363_v16, 0  ;;  %v569_v39 = vld [vmem:[%s735_s12 + $0x8] sm:$0xf0]  ;;  %v568_v40 = vor.u32 %v603_v37, %v567_v36  ;;  %v317_v42 = vld [vmem:[%s779_s0] sm:$0xf] }
  0x29   : > { %386 = vmatpush.bf16.msra.mxu0 %v378_v20  ;;  %399 = vmatpush.bf16.msra.mxu1 %v381_v21  ;;  %v572_v41 = vor.u32 %v602_v38, %v569_v39  ;;  %s562_s16 = sshll.u32 %s789_s15, 3  ;;  %s791_s21 = smov (!%p308_p9, %s709_s21), 1  ;;  %vm412_vm2 = vcmask 7168  }
  0x2a   : > { %s306_s20 = scalar_lea.vmem %s782_s3, %s562_s16  ;;  %s563_s23 = sshll.u32 %s791_s21, 3 }
  0x2b   : > { %s311_s27 = scalar_lea.vmem %s783_s4, %s563_s23  ;;  %s315_s30 = scalar_lea.vmem %s784_s5, %s563_s23 }
  0x2d   : > { %387 = vmatpush.bf16.msra.mxu0 %v592_v22  ;;  %400 = vmatpush.bf16.msra.mxu1 %v596_v23 }
  0x31   : > { %388 = vmatpush.bf16.msra.mxu0 %v584_v28  ;;  %401 = vmatpush.bf16.msra.mxu1 %v588_v29 }
  0x35   : > { %389 = vmatpush.bf16.msra.mxu0 %v576_v34  ;;  %402 = vmatpush.bf16.msra.mxu1 %v580_v35 }
  0x39   : > { %390 = vmatpush.bf16.msra.mxu0 %v568_v40  ;;  %403 = vmatpush.bf16.msra.mxu1 %v572_v41 }
  0x3c   : > { %597 = vmatmul.msk.bf16.vlgmr.msra.gmra.mxu0 %vm372_vm1, %v317_v42  ;;  %598 = vmatmul.msk.bf16.vlgmr.msra.gmra.mxu1 %vm372_vm1, %v317_v42 }
  0x96   : > { %v424_v43 = vpop.permute.xlu0 %423 }
  0xb9   : > { %v392_v44 = vpop.f32.mrf.mxu0  ;;  %v405_v45 = vpop.f32.mrf.mxu1 }
  0xba   : > { %v426_v46 = vadd.f32 %v424_v43, %v392_v44  ;;  %v427_v47 = vadd.f32 %v424_v43, %v405_v45  ;;  %v409_v48 = vadd.f32 %v405_v45, %v392_v44  ;;  %v414_v49 = vmul.f32 %v392_v44, %v392_v44 }
  0xbb   : > { %v415_v50 = vmul.f32 %v405_v45, %v405_v45 }
  0xbc   : > { %428 = vst [vmem:[%s306_s20] sm:$0xff] %v426_v46  ;;  %410 = vadd.xlane.f32.xlu0 %v409_v48 }
  0xbd   : > { %429 = vst [vmem:[%s306_s20 + $0x8] sm:$0xff] %v427_v47  ;;  %v416_v51 = vadd.f32 %v415_v50, %v414_v49 }
  0xbf   : > { %417 = vadd.xlane.f32.xlu1 %v416_v51 }
  0xc1   : > { %v394_v52 = vpop.f32.mrf.mxu0  ;;  %v407_v53 = vpop.f32.mrf.mxu1 }
 0x12f   : > { %v411_v54 = vpop.xlane.xlu0 %410 }
 0x130   : > { %413 = vst.msk [vmem:[%s311_s27] sm:$0xff] %vm412_vm2, %v411_v54 }
 0x132   : > { %v418_v55 = vpop.xlane.xlu1 %417 }
 0x133   : > { %419 = vst.msk [vmem:[%s315_s30] sm:$0xff] %vm412_vm2, %v418_v55 }
 0x134 PF: > { %p13_p10 = scmp.ge.s32.totalorder %s712_s22, 4   ;;  %s785_s18 = smov %s656_s19 }
 0x135   : > { %s786_s19 = smov %s721_s25  ;;  %s787_s20 = smov %s712_s22 }
 0x136   :  { %15 = sbr.rel (!%p13_p10) target bundleno = 2 (0x2), region = 129 }

// kernel: res_block_forward.11
= control target key start
LH: loop header
LB: loop body
LE: loop exit
PB: predicated region body
PF: predicated region fallthrough
CT: control target
= control target key end

     0   :  { %s502_s21 = smov 0   ;;  %s538_s0 = inlined_call_operand.vmem [shape: f32[8,512], index: 0, kind: input, shape index: {}]   ;;  %s539_s1 = inlined_call_operand.vmem [shape: f32[8,1], index: 1, kind: input, shape index: {}]   ;;  %s540_s2 = inlined_call_operand.vmem [shape: f32[8,1], index: 2, kind: input, shape index: {}]   ;;  %s541_s3 = inlined_call_operand.vmem [shape: f32[4,512], index: 3, kind: input, shape index: {}]   ;;  %s542_s4 = inlined_call_operand.vmem [shape: f32[8,4], index: 4, kind: input, shape index: {}]   ;;  %s543_s5 = inlined_call_operand.vmem [shape: f32[8,1], index: 5, kind: input, shape index: {}]   ;;  %s544_s6 = inlined_call_operand.vmem [shape: f32[8,512], index: 6, kind: output, shape index: {}]  }
   0x1 LB: > { %s430_s22 = sadd.s32 4294967295, %s464_s21   ;;  %p434_p0 = scmp.ge.s32.totalorder %s464_s21, 1  ;;  %s464_s21 = sphi %s502_s21, %s16_s21  }
   0x2   : > { %p224_p1 = scmp.lt.s32.totalorder %s464_s21, 3 }
   0x4   : > { %p225_p2 = pnand %p434_p0, %p224_p1 }
   0x5   : > { %s435_s25 = sshll.u32 (!%p225_p2), %s430_s22, 1 }
   0x6   : > { %228 = sbr.rel (%p225_p2) target bundleno = 158 (0x9e), region = 44  ;;  %p260_p3 = scmp.lt.s32.totalorder (!%p225_p2), %s435_s25, 3 }
   0xb   : > { %v340_v0 = vld [vmem:[%s539_s1] sm:$0xff]  ;;  %v466_v1 = vmov 0   ;;  %s546_s25 = smov (!%p260_p3, %s435_s25), 3  ;;  %vm293_vm0 = vcmask 1043456   ;;  %vm289_vm1 = vcmask 31744  }
   0xc   : > { %456 = vset.pattern.permute.xlu0 %v466_v1  ;;  %457 = vset.pattern.permute.xlu1 %v466_v1  ;;  %v348_v2 = vld [vmem:[%s540_s2] sm:$0xff]  ;;  %s438_s28 = sshll.u32 %s546_s25, 2  ;;  %s436_s12 = sshll.u32 %s546_s25, 3 }
   0xd   : > { %343 = vperm.xlu0 %456, %v340_v0   ;;  %351 = vperm.xlu1 %457, %v348_v2   ;;  %s269_s7 = scalar_lea.vmem %s541_s3, %s438_s28  ;;  %v279_v4 = vld [vmem:[%s543_s5] sm:$0xff]  ;;  %s263_s15 = scalar_lea.vmem %s538_s0, %s436_s12 }
   0xe   : > { %v278_v3 = vld [vmem:[%s269_s7] sm:$0xff]  ;;  %v339_v10 = vld [vmem:[%s263_s15 + $0x8] sm:$0xff]  ;;  %s275_s18 = scalar_lea.vmem %s544_s6, %s436_s12 }
   0xf   : > { %286 = vst [vmem:[#allocation1] ss:$2 sm:$0xff] %v278_v3  ;;  %v277_v5 = vld [vmem:[%s542_s4] sm:$0xff] }
  0x10   : > { %v338_v9 = vld [vmem:[%s263_s15] sm:$0xff] }
  0x15   : > { %282 = vperm.xlu0 %456, %v279_v4  }
  0x16   : > { %v287_v6 = vld.sshfl [vmem:[#allocation1] sm:$0xff pattern:$0x75316420]  ;;  %v288_v7 = vld.sshfl [vmem:[#allocation1 + $0x8] sm:$0xff pattern:$0x75316420] }
  0x17   : > { %441 = vmatpush.msk.msra.mxu0 %vm293_vm0, %v287_v6  ;;  %443 = vmatpush.msk.msra.mxu1 %vm293_vm0, %v288_v7 }
  0x18   : > { %442 = vmatmul.msk.f32.vlgmr.msra.gmra.mxu0 %vm289_vm1, %v277_v5  ;;  %444 = vmatmul.msk.f32.vlgmr.msra.gmra.mxu1 %vm289_vm1, %v277_v5 }
  0x7f   : > { %v344_v8 = vpop.permute.xlu0 %343  ;;  %v352_v13 = vpop.permute.xlu1 %351 }
  0x80   : > { %v346_v11 = vmul.f32 %v344_v8, %v338_v9  ;;  %v347_v12 = vmul.f32 %v344_v8, %v339_v10 }
  0x82   : > { %v354_v17 = vadd.f32 %v352_v13, %v346_v11  ;;  %v355_v18 = vadd.f32 %v352_v13, %v347_v12 }
  0x87   : > { %v283_v14 = vpop.permute.xlu0 %282 }
  0x95   : > { %v315_v15 = vpop.f32.mrf.mxu0  ;;  %v335_v16 = vpop.f32.mrf.mxu1 }
  0x96   : > { %v316_v19 = vadd.f32 %v315_v15, %v283_v14  ;;  %v336_v20 = vadd.f32 %v335_v16, %v283_v14 }
  0x98   : > { %v356_v21 = vadd.f32 %v354_v17, %v316_v19  ;;  %v357_v22 = vadd.f32 %v355_v18, %v336_v20 }
  0x9a   : > { %v358_v23 = vmax.f32 %v356_v21, 0.0  ;;  %v359_v24 = vmax.f32 %v357_v22, 0.0 }
  0x9c   : > { %360 = vst [vmem:[%s275_s18] sm:$0xff] %v358_v23 }
  0x9d   : > { %361 = vst [vmem:[%s275_s18 + $0x8] sm:$0xff] %v359_v24 }
  0x9e PF: > { %s16_s21 = sadd.s32 1, %s464_s21  }
  0x9f   : > { %p13_p4 = scmp.ge.s32.totalorder %s16_s21, 4  }
  0xa1   :  { %15 = sbr.rel (!%p13_p4) target bundleno = 1 (0x1), region = 77 }

// kernel: res_block_forward.15
= control target key start
LH: loop header
LB: loop body
LE: loop exit
PB: predicated region body
PF: predicated region fallthrough
CT: control target
= control target key end

     0   :  { %s374_s15 = smov 0   ;;  %s400_s0 = inlined_call_operand.vmem [shape: f32[8,512], index: 0, kind: input, shape index: {}]   ;;  %s401_s1 = inlined_call_operand.vmem [shape: f32[8,1], index: 1, kind: input, shape index: {}]   ;;  %s402_s2 = inlined_call_operand.vmem [shape: f32[8,1], index: 2, kind: input, shape index: {}]   ;;  %s403_s3 = inlined_call_operand.vmem [shape: f32[8,512], index: 3, kind: input, shape index: {}]   ;;  %s404_s4 = inlined_call_operand.vmem [shape: f32[8,512], index: 4, kind: output, shape index: {}]  }
   0x1 LB: > { %s317_s16 = sadd.s32 4294967295, %s346_s15   ;;  %p321_p0 = scmp.ge.s32.totalorder %s346_s15, 1  ;;  %s346_s15 = sphi %s374_s15, %s14_s15  }
   0x2   : > { %p174_p1 = scmp.lt.s32.totalorder %s346_s15, 3 }
   0x4   : > { %p175_p2 = pnand %p321_p0, %p174_p1 }
   0x5   : > { %s322_s21 = sshll.u32 (!%p175_p2), %s317_s16, 1 }
   0x6   : > { %178 = sbr.rel (%p175_p2) target bundleno = 144 (0x90), region = 36  ;;  %p206_p3 = scmp.lt.s32.totalorder (!%p175_p2), %s322_s21, 3 }
   0xb   : > { %v225_v0 = vld [vmem:[%s401_s1] sm:$0xff]  ;;  %v348_v1 = vmov 0   ;;  %s406_s21 = smov (!%p206_p3, %s322_s21), 3 }
   0xc   : > { %339 = vset.pattern.permute.xlu0 %v348_v1  ;;  %v233_v2 = vld [vmem:[%s402_s2] sm:$0xff]  ;;  %s323_s22 = sshll.u32 %s406_s21, 3 }
   0xd   : > { %228 = vperm.xlu0 %339, %v225_v0   ;;  %s209_s25 = scalar_lea.vmem %s400_s0, %s323_s22  ;;  %s215_s28 = scalar_lea.vmem %s403_s3, %s323_s22 }
   0xe   : > { %v223_v4 = vld [vmem:[%s209_s25] sm:$0xff]  ;;  %v224_v5 = vld [vmem:[%s209_s25 + $0x8] sm:$0xff]  ;;  %s221_s5 = scalar_lea.vmem %s404_s4, %s323_s22 }
   0xf   : > { %v241_v9 = vld [vmem:[%s215_s28] sm:$0xff]  ;;  %v242_v10 = vld [vmem:[%s215_s28 + $0x8] sm:$0xff] }
  0x15   : > { %236 = vperm.xlu0 %339, %v233_v2  }
  0x7f   : > { %v229_v3 = vpop.permute.xlu0 %228 }
  0x80   : > { %v231_v6 = vmul.f32 %v229_v3, %v223_v4  ;;  %v232_v7 = vmul.f32 %v229_v3, %v224_v5 }
  0x87   : > { %v237_v8 = vpop.permute.xlu0 %236 }
  0x88   : > { %v239_v11 = vadd.f32 %v237_v8, %v231_v6  ;;  %v240_v12 = vadd.f32 %v237_v8, %v232_v7 }
  0x8a   : > { %v243_v13 = vadd.f32 %v241_v9, %v239_v11  ;;  %v244_v14 = vadd.f32 %v242_v10, %v240_v12 }
  0x8c   : > { %v245_v15 = vmax.f32 %v243_v13, 0.0  ;;  %v246_v16 = vmax.f32 %v244_v14, 0.0 }
  0x8e   : > { %247 = vst [vmem:[%s221_s5] sm:$0xff] %v245_v15 }
  0x8f   : > { %248 = vst [vmem:[%s221_s5 + $0x8] sm:$0xff] %v246_v16 }
  0x90 PF: > { %s14_s15 = sadd.s32 1, %s346_s15  }
  0x91   : > { %p11_p4 = scmp.ge.s32.totalorder %s14_s15, 4  }
  0x93   :  { %13 = sbr.rel (!%p11_p4) target bundleno = 1 (0x1), region = 69 }

</bundles_post_ra>
